<compile_context>
chip_gen: v7x
topology: tpu7x:2x2x1
jax: 0.10.0
libtpu: 0.0.40
codegen_flags: <defaults>
</compile_context>

<pallas_src>
import functools

import jax
import jax.numpy as jnp
from jax.experimental import pallas as pl
from jax.experimental.pallas import tpu as pltpu


def _round_up(n, m):
    return ((n + m - 1) // m) * m


_VMEM_LIMIT_BYTES = 48 * 1024 * 1024   # safe on v7x (64 MiB physical VMEM)
_VMEM_MARGIN_BYTES = 8 * 1024 * 1024   # headroom for compiler scratch / pipelining


def auxiliary_kernel(disc_dim, x_ref, w1_ref, b1_ref, w2_ref, b2_ref,
                     disc_ref, cont_ref):
    x = x_ref[...]
    if x.dtype != jnp.bfloat16:           # no-op when the producer gives bf16
        x = x.astype(jnp.bfloat16)

    # fc1 (bf16 operands, f32 MXU accumulation) + ReLU in f32
    h = jnp.dot(x, w1_ref[...], preferred_element_type=jnp.float32) + b1_ref[...]
    h = jnp.maximum(h, 0.0)

    # fc2 -> "inferred"; split into the two outputs here (no extra HBM pass)
    out = jnp.dot(h.astype(jnp.bfloat16), w2_ref[...],
                  preferred_element_type=jnp.float32) + b2_ref[...]
    disc_ref[...] = out[:, :disc_dim].astype(disc_ref.dtype)
    cont_ref[...] = out[:, disc_dim:].astype(cont_ref.dtype)


def _pick_batch_tile(B, res_size, ndh, out_dim, x_itemsize, weight_bytes):
    """Largest VMEM-friendly batch tile (multiple of 8). Tiny batches -> one
    grid step; big batches -> >=2 steps so both v7x TensorCores get work."""
    Bp8 = _round_up(max(B, 1), 8)
    per_row = (2 * res_size * x_itemsize    # double-buffered x tile
               + 2 * out_dim * 4            # double-buffered f32 outputs
               + ndh * (4 + 2)              # h: f32 accumulator + bf16 recast
               + out_dim * 4)               # fc2 f32 accumulator
    budget = _VMEM_LIMIT_BYTES - weight_bytes - _VMEM_MARGIN_BYTES
    tb_vmem = max(8, (budget // per_row) // 8 * 8)
    if Bp8 <= 256:
        return min(Bp8, tb_vmem)            # whole batch, one grid step
    return max(8, min(tb_vmem, _round_up(pl.cdiv(Bp8, 2), 8)))


@functools.partial(jax.jit, static_argnames=("disc_dim",))
def auxiliary_forward(x, params, *, disc_dim):
    """x: (B, resSize).  Returns (discrete (B, disc_dim), continuous (B, cont_dim))."""
    w1, b1, w2, b2 = params
    B, res_size = x.shape
    ndh = w1.shape[1]
    out_dim = w2.shape[1]
    cont_dim = out_dim - disc_dim

    x_itemsize = jnp.dtype(x.dtype).itemsize
    weight_bytes = sum(int(a.size) * jnp.dtype(a.dtype).itemsize
                       for a in (w1, b1, w2, b2))
    assert weight_bytes < _VMEM_LIMIT_BYTES - _VMEM_MARGIN_BYTES, \
        "resident-weight path requires weights to fit in VMEM"

    TB = _pick_batch_tile(B, res_size, ndh, out_dim, x_itemsize, weight_bytes)
    Bp = _round_up(max(B, 1), TB)
    if Bp != B:
        x = jnp.pad(x, ((0, Bp - B), (0, 0)))

    grid = (Bp // TB,)
    resident = lambda a: pl.BlockSpec(a.shape, lambda i: (0,) * a.ndim)

    cost = pl.CostEstimate(
        flops=2 * Bp * (res_size * ndh + ndh * out_dim),
        bytes_accessed=Bp * (res_size * x_itemsize + out_dim * 4) + weight_bytes,
        transcendentals=0,
    )

    discrete, continuous = pl.pallas_call(
        functools.partial(auxiliary_kernel, disc_dim),
        out_shape=(jax.ShapeDtypeStruct((Bp, disc_dim), jnp.float32),
                   jax.ShapeDtypeStruct((Bp, cont_dim), jnp.float32)),
        grid=grid,
        in_specs=[
            pl.BlockSpec((TB, res_size), lambda i: (i, 0)),   # x: batch-tiled
            resident(w1), resident(b1),                        # weights resident
            resident(w2), resident(b2),
        ],
        out_specs=(pl.BlockSpec((TB, disc_dim), lambda i: (i, 0)),
                   pl.BlockSpec((TB, cont_dim), lambda i: (i, 0))),
        compiler_params=pltpu.CompilerParams(
            dimension_semantics=("parallel",),
            vmem_limit_bytes=_VMEM_LIMIT_BYTES),
        cost_estimate=cost,
    )(x, w1, b1, w2, b2)

    return discrete[:B], continuous[:B]


def init_params(key, res_size, ndh, disc_dim, cont_dim):
    """Linear weights ~ N(0, 0.02) (bf16 for the MXU), zero biases (f32)."""
    k1, k2 = jax.random.split(key, 2)
    out_dim = disc_dim + cont_dim
    w1 = (0.02 * jax.random.normal(k1, (res_size, ndh), jnp.float32)
          ).astype(jnp.bfloat16)
    b1 = jnp.zeros((1, ndh), jnp.float32)
    w2 = (0.02 * jax.random.normal(k2, (ndh, out_dim), jnp.float32)
          ).astype(jnp.bfloat16)
    b2 = jnp.zeros((1, out_dim), jnp.float32)
    return (w1, b1, w2, b2)


if __name__ == "__main__":
    # small "opt" consistent with Auxiliary
    res_size, ndh, disc_dim, cont_dim = 16, 32, 8, 4
    batch = 2

    key = jax.random.PRNGKey(0)
    kp, kx = jax.random.split(key, 2)
    params = init_params(kp, res_size, ndh, disc_dim, cont_dim)
    # producer supplies bf16 features (cuts the dominant HBM stream in half)
    x = jax.random.normal(kx, (batch, res_size), jnp.float32).astype(jnp.bfloat16)

    discrete, continuous = auxiliary_forward(x, params, disc_dim=disc_dim)
    jax.block_until_ready((discrete, continuous))

    # sanity check vs pure-JAX reference with identical bf16/f32 mixed precision
    w1, b1, w2, b2 = params
    h_ref = jnp.maximum(
        jnp.dot(x, w1, preferred_element_type=jnp.float32) + b1, 0.0)
    inf_ref = jnp.dot(h_ref.astype(jnp.bfloat16), w2,
                      preferred_element_type=jnp.float32) + b2
    ref_disc, ref_cont = inf_ref[:, :disc_dim], inf_ref[:, disc_dim:]

    assert discrete.shape == (batch, disc_dim)
    assert continuous.shape == (batch, cont_dim)
    assert jnp.allclose(discrete, ref_disc, atol=1e-4), "discrete mismatch"
    assert jnp.allclose(continuous, ref_cont, atol=1e-4), "continuous mismatch"

    print("KERNEL_OK")
</pallas_src>

<mosaic_0001>
module attributes {stable_mosaic.version = 11 : i64} {
  func.func @auxiliary_kernel(%arg0: i32, %arg1: memref<8x16xbf16, #tpu.memory_space<vmem>>, %arg2: memref<16x32xbf16, #tpu.memory_space<vmem>>, %arg3: memref<1x32xf32, #tpu.memory_space<vmem>>, %arg4: memref<32x12xbf16, #tpu.memory_space<vmem>>, %arg5: memref<1x12xf32, #tpu.memory_space<vmem>>, %arg6: memref<8x8xf32, #tpu.memory_space<vmem>>, %arg7: memref<8x4xf32, #tpu.memory_space<vmem>>) attributes {dimension_semantics = [#tpu.dimension_semantics<parallel>], iteration_bounds = array<i64: 1>, scalar_prefetch = 0 : i64, scratch_operands = 0 : i64, tpu.core_type = #tpu.core_type<tc>, window_params = [{transform_indices = @transform_0, window_bounds = array<i64: 8, 16>}, {pipeline_mode = #tpu.pipeline_mode<synchronous>, transform_indices = @transform_1, window_bounds = array<i64: 16, 32>}, {pipeline_mode = #tpu.pipeline_mode<synchronous>, transform_indices = @transform_2, window_bounds = array<i64: 1, 32>}, {pipeline_mode = #tpu.pipeline_mode<synchronous>, transform_indices = @transform_3, window_bounds = array<i64: 32, 12>}, {pipeline_mode = #tpu.pipeline_mode<synchronous>, transform_indices = @transform_4, window_bounds = array<i64: 1, 12>}, {transform_indices = @transform_5, window_bounds = array<i64: 8, 8>}, {transform_indices = @transform_6, window_bounds = array<i64: 8, 4>}]} {
    %c0 = arith.constant 0 : index
    %c0_0 = arith.constant 0 : index
    %0 = vector.load %arg1[%c0, %c0_0] : memref<8x16xbf16, #tpu.memory_space<vmem>>, vector<8x16xbf16>
    %c0_1 = arith.constant 0 : index
    %c0_2 = arith.constant 0 : index
    %1 = vector.load %arg2[%c0_1, %c0_2] : memref<16x32xbf16, #tpu.memory_space<vmem>>, vector<16x32xbf16>
    %cst = arith.constant dense<0.000000e+00> : vector<8x32xf32>
    %2 = tpu.matmul %0, %1, %cst {dimension_numbers = #tpu.dot_dimension_numbers<[1], [0], [0], [1], [0, 0, 1, 1], [], []>} : vector<8x16xbf16>, vector<16x32xbf16>, vector<8x32xf32> -> vector<8x32xf32>
    %c0_3 = arith.constant 0 : index
    %c0_4 = arith.constant 0 : index
    %3 = vector.load %arg3[%c0_3, %c0_4] : memref<1x32xf32, #tpu.memory_space<vmem>>, vector<1x32xf32>
    %4 = vector.broadcast %3 : vector<1x32xf32> to vector<8x32xf32>
    %5 = arith.addf %2, %4 : vector<8x32xf32>
    %cst_5 = arith.constant 0.000000e+00 : f32
    %6 = vector.broadcast %cst_5 : f32 to vector<8x32xf32>
    %7 = arith.maximumf %5, %6 : vector<8x32xf32>
    %8 = arith.truncf %7 : vector<8x32xf32> to vector<8x32xbf16>
    %c0_6 = arith.constant 0 : index
    %c0_7 = arith.constant 0 : index
    %9 = vector.load %arg4[%c0_6, %c0_7] : memref<32x12xbf16, #tpu.memory_space<vmem>>, vector<32x12xbf16>
    %cst_8 = arith.constant dense<0.000000e+00> : vector<8x12xf32>
    %10 = tpu.matmul %8, %9, %cst_8 {dimension_numbers = #tpu.dot_dimension_numbers<[1], [0], [0], [1], [0, 0, 1, 1], [], []>} : vector<8x32xbf16>, vector<32x12xbf16>, vector<8x12xf32> -> vector<8x12xf32>
    %c0_9 = arith.constant 0 : index
    %c0_10 = arith.constant 0 : index
    %11 = vector.load %arg5[%c0_9, %c0_10] : memref<1x12xf32, #tpu.memory_space<vmem>>, vector<1x12xf32>
    %12 = vector.broadcast %11 : vector<1x12xf32> to vector<8x12xf32>
    %13 = arith.addf %10, %12 : vector<8x12xf32>
    %14 = vector.extract_strided_slice %13 {offsets = [0, 0], sizes = [8, 8], strides = [1, 1]} : vector<8x12xf32> to vector<8x8xf32>
    %c0_11 = arith.constant 0 : index
    %c0_12 = arith.constant 0 : index
    %15 = vector.load %arg6[%c0_11, %c0_12] : memref<8x8xf32, #tpu.memory_space<vmem>>, vector<8x8xf32>
    tpu.vector_store %arg6[%c0_11, %c0_12], %14 {strides = array<i32>} : memref<8x8xf32, #tpu.memory_space<vmem>>, vector<8x8xf32>,
    %16 = vector.extract_strided_slice %13 {offsets = [0, 8], sizes = [8, 4], strides = [1, 1]} : vector<8x12xf32> to vector<8x4xf32>
    %c0_13 = arith.constant 0 : index
    %c0_14 = arith.constant 0 : index
    %17 = vector.load %arg7[%c0_13, %c0_14] : memref<8x4xf32, #tpu.memory_space<vmem>>, vector<8x4xf32>
    tpu.vector_store %arg7[%c0_13, %c0_14], %16 {strides = array<i32>} : memref<8x4xf32, #tpu.memory_space<vmem>>, vector<8x4xf32>,
    return
  }
  func.func @transform_0(%arg0: i32) -> (i32, i32) {
    %c0_i32 = arith.constant 0 : i32
    %c0_i32_0 = arith.constant 0 : i32
    return %arg0, %c0_i32 : i32, i32
  }
  func.func @transform_1(%arg0: i32) -> (i32, i32) {
    %c0_i32 = arith.constant 0 : i32
    %c0_i32_0 = arith.constant 0 : i32
    %c0_i32_1 = arith.constant 0 : i32
    return %c0_i32, %c0_i32_0 : i32, i32
  }
  func.func @transform_2(%arg0: i32) -> (i32, i32) {
    %c0_i32 = arith.constant 0 : i32
    %c0_i32_0 = arith.constant 0 : i32
    %c0_i32_1 = arith.constant 0 : i32
    return %c0_i32, %c0_i32_0 : i32, i32
  }
  func.func @transform_3(%arg0: i32) -> (i32, i32) {
    %c0_i32 = arith.constant 0 : i32
    %c0_i32_0 = arith.constant 0 : i32
    %c0_i32_1 = arith.constant 0 : i32
    return %c0_i32, %c0_i32_0 : i32, i32
  }
  func.func @transform_4(%arg0: i32) -> (i32, i32) {
    %c0_i32 = arith.constant 0 : i32
    %c0_i32_0 = arith.constant 0 : i32
    %c0_i32_1 = arith.constant 0 : i32
    return %c0_i32, %c0_i32_0 : i32, i32
  }
  func.func @transform_5(%arg0: i32) -> (i32, i32) {
    %c0_i32 = arith.constant 0 : i32
    %c0_i32_0 = arith.constant 0 : i32
    return %arg0, %c0_i32 : i32, i32
  }
  func.func @transform_6(%arg0: i32) -> (i32, i32) {
    %c0_i32 = arith.constant 0 : i32
    %c0_i32_0 = arith.constant 0 : i32
    return %arg0, %c0_i32 : i32, i32
  }
}

</mosaic_0001>

<bundles_post_ra>
// kernel: auxiliary_forward.1
= control target key start
LH: loop header
LB: loop body
LE: loop exit
PB: predicated region body
PF: predicated region fallthrough
CT: control target
= control target key end

     0   :  { %v200_v0 = vmov 0.0   ;;  %vm201_vm0 = vmmov 0   ;;  %vm39_vm1 = vcmask 130048   ;;  %vm108_vm2 = vcmask 261120   ;;  %s202_s7 = smov 120   ;;  %s262_s1 = inlined_call_operand.vmem [shape: bf16[16,32], index: 1, kind: input, shape index: {}]   ;;  %s263_s0 = inlined_call_operand.vmem [shape: bf16[8,16], index: 0, kind: input, shape index: {}]   ;;  %s264_s3 = inlined_call_operand.vmem [shape: bf16[32,12], index: 3, kind: input, shape index: {}]   ;;  %s265_s2 = inlined_call_operand.vmem [shape: f32[1,32], index: 2, kind: input, shape index: {}]   ;;  %s266_s4 = inlined_call_operand.vmem [shape: f32[1,12], index: 4, kind: input, shape index: {}]   ;;  %s267_s5 = inlined_call_operand.vmem [shape: f32[8,8], index: 5, kind: output, shape index: {0}]   ;;  %s268_s6 = inlined_call_operand.vmem [shape: f32[8,4], index: 6, kind: output, shape index: {1}]  }
   0x1   :  { %180 = vmatprep.subr.bf16.mxu0 %v200_v0  ;;  %v197_v1 = vld [vmem:[%s262_s1] sm:$0xff]   ;;  %182 = vmatprep.mubr.msk.bf16.mxu0 %vm201_vm0, %v200_v0  ;;  %v199_v4 = vld [vmem:[%s264_s3 + $0x8] sm:$0xff]   ;;  %vm152_vm3 = vcmask 64512   ;;  %vm158_vm4 = vcmask 31744  }
   0x2   :  { %186 = vmatprep.subr.bf16.mxu1 %v200_v0  ;;  %190 = vmatprep.mubr.msk.bf16.mxu1 %vm201_vm0, %v200_v0  ;;  %v23_v2 = vld [vmem:[%s263_s0] sm:$0xf] }
   0x3   :  { %181 = vmatpush3.bf16.msra.mxu0 %v197_v1  ;;  %v198_v3 = vld [vmem:[%s264_s3] sm:$0xff]  }
   0x4   :  { %187 = vmatpush3.bf16.msra.mxu1 %v198_v3  ;;  %v168_v5 = vld [vmem:[%s265_s2] ss:$0 sm:$0xff] }
   0x5   :  { %188 = vmatprep.subr.bf16.mxu1 %v200_v0  ;;  %v171_v13 = vld [vmem:[%s266_s4] ss:$0 sm:$0xff] }
   0x6   :  { %183 = vmatmul.mubr.msk.bf16.vlgmr.msra.gmra.mrb[0].mxu0 %vm39_vm1, %v23_v2 }
   0x8   :  { %189 = vmatpush3.bf16.msra.mxu1 %v199_v4 }
  0xd9   :  { %v77_v6 = vpop.f32.mrb[0].mxu0 }
  0xda   :  { %v78_v7 = vadd.f32 %v168_v5, %v77_v6  ;;  %v184_v8 = vpop.f32.mrb[1].mxu0 }
  0xdb   :  { %v80_v9 = vpop.f32.mrb[2].mxu0 }
  0xdc   :  { %v83_v10 = vmax.f32 %v78_v7, 0.0  ;;  %v185_v11 = vpop.f32.mrb[3].mxu0 }
  0xde   :  { %v84_v12 = vpack.c.bf16 %v83_v10, %v83_v10 }
  0xe0   :  { %191 = vmatmul.mubr.msk.bf16.vlgmr.msra.gmra.mrb[0].mxu1 %vm108_vm2, %v84_v12 }
 0x1b3   :  { %v146_v14 = vpop.f32.mrb[0].mxu1 }
 0x1b4   :  { %v147_v15 = vadd.f32 %v171_v13, %v146_v14  ;;  %v192_v16 = vpop.f32.mrb[1].mxu1 }
 0x1b5   :  { %v149_v17 = vpop.f32.mrb[2].mxu1 }
 0x1b6   :  { %153 = vst.msk [vmem:[%s267_s5] sm:$0xff] %vm152_vm3, %v147_v15  ;;  %v193_v18 = vpop.f32.mrb[3].mxu1  ;;  %155 = vrot.lane.b32.xlu0 %v147_v15, %s202_s7 }
 0x228   :  { %v156_v19 = vpop.permute.xlu0 %155 }
 0x229   :  { %159 = vst.msk [vmem:[%s268_s6] sm:$0xff] %vm158_vm4, %v156_v19 }

</bundles_post_ra>
